<compile_context>
chip_gen: v6e
topology: v6e:2x2x1
jax: 0.10.0
libtpu: 0.0.40
codegen_flags: <defaults>
</compile_context>

<pallas_src>
import jax
import jax.numpy as jnp
from jax.experimental import pallas as pl
from jax.experimental.pallas import tpu as pltpu


def mlp_kernel(w1_ref, b1_ref, w2_ref, b2_ref, x_ref, o_ref):
    # x_ref: (3, S, 128) -- feature-major, batch spread over (sublane, lane).
    x0 = x_ref[0]                          # (S, 128) dense vregs
    x1 = x_ref[1]
    x2 = x_ref[2]

    # hidden = ReLU(x @ W1.T + b1); K=3 contraction unrolled on the VPU.
    h0 = x0 * w1_ref[0, 0] + x1 * w1_ref[0, 1] + x2 * w1_ref[0, 2] + b1_ref[0]
    h1 = x0 * w1_ref[1, 0] + x1 * w1_ref[1, 1] + x2 * w1_ref[1, 2] + b1_ref[1]
    a0 = jnp.maximum(h0, 0.0)
    a1 = jnp.maximum(h1, 0.0)

    # out = a @ W2.T + b2; K=2 contraction unrolled, bias folded as scalar add.
    out = a0 * w2_ref[0, 0] + a1 * w2_ref[0, 1] + b2_ref[0]
    o_ref[...] = out.astype(o_ref.dtype)   # (S, 128): dense, unmasked stores


def mlp_forward(x, w1, b1, w2, b2, *, block_rows=64):
    """x: (B, 3) f32; torch-layout params w1 (2,3), b1 (2,), w2 (1,2), b2 (1,).

    Returns (B, 1), matching nn.Linear(3,2) -> ReLU -> nn.Linear(2,1).
    """
    B = x.shape[0]
    lanes = 128

    # Batch -> (rows, 128) grid of samples.  rows is a multiple of 8 (full
    # sublane tiles); rows-per-block is at most `block_rows` (64 -> 8192
    # samples / step, big enough to amortize the ~0.35 us per-step overhead).
    rows = max(8, ((-(-B // lanes) + 7) // 8) * 8)
    s_blk = min(block_rows, rows)
    rows = ((rows + s_blk - 1) // s_blk) * s_blk
    b_pad = rows * lanes

    # Feature-major, zero-padded along batch, then folded to (3, rows, 128).
    x_t = jnp.zeros((3, b_pad), x.dtype).at[:, :B].set(x.T)
    x_t = x_t.reshape(3, rows, lanes)

    out_t = pl.pallas_call(
        mlp_kernel,
        out_shape=jax.ShapeDtypeStruct((rows, lanes), x.dtype),
        grid=(rows // s_blk,),
        in_specs=[
            # Tiny constant params: untiled, resident in SMEM (no per-step DMA,
            # no padded (8,128) VMEM tiles for (2,3)/(2,)/(1,2)/(1,) operands).
            pl.BlockSpec(memory_space=pltpu.MemorySpace.SMEM),   # w1 (2,3)
            pl.BlockSpec(memory_space=pltpu.MemorySpace.SMEM),   # b1 (2,)
            pl.BlockSpec(memory_space=pltpu.MemorySpace.SMEM),   # w2 (1,2)
            pl.BlockSpec(memory_space=pltpu.MemorySpace.SMEM),   # b2 (1,)
            # Activations: tiled over batch rows, auto double-buffered.
            pl.BlockSpec((3, s_blk, lanes), lambda i: (0, i, 0)),  # x_t
        ],
        out_specs=pl.BlockSpec((s_blk, lanes), lambda i: (i, 0)),
        compiler_params=pltpu.CompilerParams(
            dimension_semantics=("parallel",)),                  # dual-TC on v7x
    )(w1, b1, w2, b2, x_t)

    # Undo the (rows, 128) batch folding and drop the zero padding.
    return out_t.reshape(-1)[:B, None]                           # (B, 1)


if __name__ == "__main__":
    key = jax.random.PRNGKey(0)
    k1, k2, k3, k4, kx = jax.random.split(key, 5)

    # Deterministic init mimicking nn.Linear default: U(-1/sqrt(fan_in), +1/sqrt(fan_in)).
    bound1 = 1.0 / jnp.sqrt(3.0)
    w1 = jax.random.uniform(k1, (2, 3), jnp.float32, -bound1, bound1)   # (out, in)
    b1 = jax.random.uniform(k2, (2,), jnp.float32, -bound1, bound1)
    bound2 = 1.0 / jnp.sqrt(2.0)
    w2 = jax.random.uniform(k3, (1, 2), jnp.float32, -bound2, bound2)
    b2 = jax.random.uniform(k4, (1,), jnp.float32, -bound2, bound2)

    # Small batch of 3-feature inputs (Linear(3, 2) input dim).
    x = jax.random.normal(kx, (8, 3), jnp.float32)

    out = mlp_forward(x, w1, b1, w2, b2)
    out = jax.block_until_ready(out)

    # Pure-JAX reference (same math as the PyTorch forward).
    ref = jnp.maximum(x @ w1.T + b1, 0.0) @ w2.T + b2
    assert out.shape == (8, 1), out.shape
    assert jnp.allclose(out, ref, atol=1e-5, rtol=1e-5), (out, ref)

    # Also check the spec's x = torch.ones(3) case as a batch of one.
    x1 = jnp.ones((1, 3), jnp.float32)
    out1 = jax.block_until_ready(mlp_forward(x1, w1, b1, w2, b2))
    ref1 = jnp.maximum(x1 @ w1.T + b1, 0.0) @ w2.T + b2
    assert jnp.allclose(out1, ref1, atol=1e-5, rtol=1e-5), (out1, ref1)

    print("KERNEL_OK")
</pallas_src>

<mosaic_0001>
module attributes {stable_mosaic.version = 11 : i64} {
  func.func @mlp_kernel(%arg0: i32, %arg1: memref<2x3xf32, #tpu.memory_space<smem>>, %arg2: memref<2xf32, #tpu.memory_space<smem>>, %arg3: memref<1x2xf32, #tpu.memory_space<smem>>, %arg4: memref<1xf32, #tpu.memory_space<smem>>, %arg5: memref<3x8x128xf32, #tpu.memory_space<vmem>>, %arg6: memref<8x128xf32, #tpu.memory_space<vmem>>) attributes {dimension_semantics = [#tpu.dimension_semantics<parallel>], iteration_bounds = array<i64: 1>, scalar_prefetch = 0 : i64, scratch_operands = 0 : i64, tpu.core_type = #tpu.core_type<tc>, window_params = [{transform_indices = @transform_0, window_bounds = array<i64: 2, 3>}, {transform_indices = @transform_1, window_bounds = array<i64: 2>}, {transform_indices = @transform_2, window_bounds = array<i64: 1, 2>}, {transform_indices = @transform_3, window_bounds = array<i64: 1>}, {transform_indices = @transform_4, window_bounds = array<i64: 3, 8, 128>}, {transform_indices = @transform_5, window_bounds = array<i64: 8, 128>}]} {
    %c0 = arith.constant 0 : index
    %c0_0 = arith.constant 0 : index
    %c0_1 = arith.constant 0 : index
    %0 = vector.load %arg5[%c0, %c0_0, %c0_1] : memref<3x8x128xf32, #tpu.memory_space<vmem>>, vector<1x8x128xf32>
    %1 = vector.shape_cast %0 : vector<1x8x128xf32> to vector<8x128xf32>
    %c1 = arith.constant 1 : index
    %c0_2 = arith.constant 0 : index
    %c0_3 = arith.constant 0 : index
    %2 = vector.load %arg5[%c1, %c0_2, %c0_3] : memref<3x8x128xf32, #tpu.memory_space<vmem>>, vector<1x8x128xf32>
    %3 = vector.shape_cast %2 : vector<1x8x128xf32> to vector<8x128xf32>
    %c2 = arith.constant 2 : index
    %c0_4 = arith.constant 0 : index
    %c0_5 = arith.constant 0 : index
    %4 = vector.load %arg5[%c2, %c0_4, %c0_5] : memref<3x8x128xf32, #tpu.memory_space<vmem>>, vector<1x8x128xf32>
    %5 = vector.shape_cast %4 : vector<1x8x128xf32> to vector<8x128xf32>
    %c0_6 = arith.constant 0 : index
    %c0_7 = arith.constant 0 : index
    %6 = memref.load %arg1[%c0_6, %c0_7] : memref<2x3xf32, #tpu.memory_space<smem>>
    %7 = vector.broadcast %6 : f32 to vector<8x128xf32>
    %8 = arith.mulf %1, %7 : vector<8x128xf32>
    %c0_8 = arith.constant 0 : index
    %c1_9 = arith.constant 1 : index
    %9 = memref.load %arg1[%c0_8, %c1_9] : memref<2x3xf32, #tpu.memory_space<smem>>
    %10 = vector.broadcast %9 : f32 to vector<8x128xf32>
    %11 = arith.mulf %3, %10 : vector<8x128xf32>
    %12 = arith.addf %8, %11 : vector<8x128xf32>
    %c0_10 = arith.constant 0 : index
    %c2_11 = arith.constant 2 : index
    %13 = memref.load %arg1[%c0_10, %c2_11] : memref<2x3xf32, #tpu.memory_space<smem>>
    %14 = vector.broadcast %13 : f32 to vector<8x128xf32>
    %15 = arith.mulf %5, %14 : vector<8x128xf32>
    %16 = arith.addf %12, %15 : vector<8x128xf32>
    %c0_12 = arith.constant 0 : index
    %17 = memref.load %arg2[%c0_12] : memref<2xf32, #tpu.memory_space<smem>>
    %18 = vector.broadcast %17 : f32 to vector<8x128xf32>
    %19 = arith.addf %16, %18 : vector<8x128xf32>
    %c1_13 = arith.constant 1 : index
    %c0_14 = arith.constant 0 : index
    %20 = memref.load %arg1[%c1_13, %c0_14] : memref<2x3xf32, #tpu.memory_space<smem>>
    %21 = vector.broadcast %20 : f32 to vector<8x128xf32>
    %22 = arith.mulf %1, %21 : vector<8x128xf32>
    %c1_15 = arith.constant 1 : index
    %c1_16 = arith.constant 1 : index
    %23 = memref.load %arg1[%c1_15, %c1_16] : memref<2x3xf32, #tpu.memory_space<smem>>
    %24 = vector.broadcast %23 : f32 to vector<8x128xf32>
    %25 = arith.mulf %3, %24 : vector<8x128xf32>
    %26 = arith.addf %22, %25 : vector<8x128xf32>
    %c1_17 = arith.constant 1 : index
    %c2_18 = arith.constant 2 : index
    %27 = memref.load %arg1[%c1_17, %c2_18] : memref<2x3xf32, #tpu.memory_space<smem>>
    %28 = vector.broadcast %27 : f32 to vector<8x128xf32>
    %29 = arith.mulf %5, %28 : vector<8x128xf32>
    %30 = arith.addf %26, %29 : vector<8x128xf32>
    %c1_19 = arith.constant 1 : index
    %31 = memref.load %arg2[%c1_19] : memref<2xf32, #tpu.memory_space<smem>>
    %32 = vector.broadcast %31 : f32 to vector<8x128xf32>
    %33 = arith.addf %30, %32 : vector<8x128xf32>
    %cst = arith.constant 0.000000e+00 : f32
    %34 = vector.broadcast %cst : f32 to vector<8x128xf32>
    %35 = arith.maximumf %19, %34 : vector<8x128xf32>
    %cst_20 = arith.constant 0.000000e+00 : f32
    %36 = vector.broadcast %cst_20 : f32 to vector<8x128xf32>
    %37 = arith.maximumf %33, %36 : vector<8x128xf32>
    %c0_21 = arith.constant 0 : index
    %c0_22 = arith.constant 0 : index
    %38 = memref.load %arg3[%c0_21, %c0_22] : memref<1x2xf32, #tpu.memory_space<smem>>
    %39 = vector.broadcast %38 : f32 to vector<8x128xf32>
    %40 = arith.mulf %35, %39 : vector<8x128xf32>
    %c0_23 = arith.constant 0 : index
    %c1_24 = arith.constant 1 : index
    %41 = memref.load %arg3[%c0_23, %c1_24] : memref<1x2xf32, #tpu.memory_space<smem>>
    %42 = vector.broadcast %41 : f32 to vector<8x128xf32>
    %43 = arith.mulf %37, %42 : vector<8x128xf32>
    %44 = arith.addf %40, %43 : vector<8x128xf32>
    %c0_25 = arith.constant 0 : index
    %45 = memref.load %arg4[%c0_25] : memref<1xf32, #tpu.memory_space<smem>>
    %46 = vector.broadcast %45 : f32 to vector<8x128xf32>
    %47 = arith.addf %44, %46 : vector<8x128xf32>
    %c0_26 = arith.constant 0 : index
    %c0_27 = arith.constant 0 : index
    %48 = vector.load %arg6[%c0_26, %c0_27] : memref<8x128xf32, #tpu.memory_space<vmem>>, vector<8x128xf32>
    tpu.vector_store %arg6[%c0_26, %c0_27], %47 {strides = array<i32>} : memref<8x128xf32, #tpu.memory_space<vmem>>, vector<8x128xf32>,
    return
  }
  func.func @transform_0(%arg0: i32) -> (i32, i32) {
    %c0_i32 = arith.constant 0 : i32
    %c0_i32_0 = arith.constant 0 : i32
    %c0_i32_1 = arith.constant 0 : i32
    return %c0_i32, %c0_i32_0 : i32, i32
  }
  func.func @transform_1(%arg0: i32) -> i32 {
    %c0_i32 = arith.constant 0 : i32
    %c0_i32_0 = arith.constant 0 : i32
    return %c0_i32 : i32
  }
  func.func @transform_2(%arg0: i32) -> (i32, i32) {
    %c0_i32 = arith.constant 0 : i32
    %c0_i32_0 = arith.constant 0 : i32
    %c0_i32_1 = arith.constant 0 : i32
    return %c0_i32, %c0_i32_0 : i32, i32
  }
  func.func @transform_3(%arg0: i32) -> i32 {
    %c0_i32 = arith.constant 0 : i32
    %c0_i32_0 = arith.constant 0 : i32
    return %c0_i32 : i32
  }
  func.func @transform_4(%arg0: i32) -> (i32, i32, i32) {
    %c0_i32 = arith.constant 0 : i32
    %c0_i32_0 = arith.constant 0 : i32
    %c0_i32_1 = arith.constant 0 : i32
    return %c0_i32, %arg0, %c0_i32_0 : i32, i32, i32
  }
  func.func @transform_5(%arg0: i32) -> (i32, i32) {
    %c0_i32 = arith.constant 0 : i32
    %c0_i32_0 = arith.constant 0 : i32
    return %arg0, %c0_i32 : i32, i32
  }
}

</mosaic_0001>

<bundles_post_ra>
// kernel: tpu_custom_call.1
= control target key start
LH: loop header
LB: loop body
LE: loop exit
PB: predicated region body
PF: predicated region fallthrough
CT: control target
= control target key end

     0   :  { %11 = vsyncpa [#allocation6], 0  ;;  %s288_s0 = inlined_call_operand.vmem [shape: f32[2,3], index: 0, kind: input, shape index: {}]   ;;  %s289_s1 = inlined_call_operand.vmem [shape: f32[2], index: 1, kind: input, shape index: {}]   ;;  %s290_s2 = inlined_call_operand.vmem [shape: f32[1,2], index: 2, kind: input, shape index: {}]   ;;  %s291_s3 = inlined_call_operand.<no memory space> [shape: f32[1], index: 3, kind: input, shape index: {}]   ;;  %s292_s4 = inlined_call_operand.hbm [shape: f32[3,8,128], index: 4, kind: input, shape index: {}]   ;;  %s293_s5 = inlined_call_operand.hbm [shape: f32[8,128], index: 5, kind: output, shape index: {}]  }
   0x1   :  { %12 = vsyncpa [#allocation8], 0 }
   0x2   :  { %13 = vsyncpa [#allocation4], 0  ;;  %s31_s20 = sshll.u32 %s289_s1, 4  ;;  %s32_s20 = int_to_ptr.vmem [resolvable:$true] %s31_s20 }
   0x3   :  { %14 = vsyncpa [#allocation5], 0  ;;  %s21_s23 = sshll.u32 %s288_s0, 4  ;;  %s149_s24 = scalar_lea.vmem %s32_s20, 16  ;;  %s22_s23 = int_to_ptr.vmem [resolvable:$true] %s21_s23 }
   0x4   :  { %p150_p0 = scmp.ne.s32.totalorder %s32_s20, %s149_s24  ;;  %p154_p1 = scmp.lt.s32.totalorder %s32_s20, %s32_s20 }
   0x5   :  { %p155_p2 = scmp.lt.s32.totalorder %s149_s24, %s149_s24 }
   0x7   :  { %p156_p3 = por %p155_p2, %p154_p1 }
   0x9   :  { %p157_p4 = pnand %p156_p3, %p150_p0 }
   0xb   :  { %160 = shalt.err (!%p157_p4)
}
   0xc   :  { %s233_s25 = smov [#allocation7]   ;;  %s161_s26 = scalar_lea.vmem %s22_s23, 32 }
   0xd   :  { %34 = dma.vmem_to_smem %s32_s20, 16, %s233_s25, [#allocation8]  }
   0xe   :  { %p162_p5 = scmp.ne.s32.totalorder %s22_s23, %s161_s26  ;;  %p166_p6 = scmp.lt.s32.totalorder %s22_s23, %s22_s23 }
   0xf   :  { %p167_p7 = scmp.lt.s32.totalorder %s161_s26, %s161_s26 }
  0x11   :  { %p168_p8 = por %p167_p7, %p166_p6 }
  0x13   :  { %p169_p9 = pnand %p168_p8, %p162_p5 }
  0x15   :  { %172 = shalt.err (!%p169_p9)
}
  0x16   :  { %s234_s1 = smov [#allocation3]   ;;  %s41_s28 = sshll.u32 %s290_s2, 4  ;;  %s42_s28 = int_to_ptr.vmem [resolvable:$true] %s41_s28 }
  0x17   :  { %24 = dma.vmem_to_smem %s22_s23, 32, %s234_s1, [#allocation6]  }
  0x18   :  { %s173_s29 = scalar_lea.vmem %s42_s28, 16  ;;  %p178_p11 = scmp.lt.s32.totalorder %s42_s28, %s42_s28 }
  0x19   :  { %p174_p10 = scmp.ne.s32.totalorder %s42_s28, %s173_s29  ;;  %p179_p12 = scmp.lt.s32.totalorder %s173_s29, %s173_s29 }
  0x1b   :  { %p180_p13 = por %p179_p12, %p178_p11 }
  0x1d   :  { %p181_p0 = pnand %p180_p13, %p174_p10 }
  0x1f   :  { %184 = shalt.err (!%p181_p0)
}
  0x20   :  { %s235_s30 = smov [#allocation9]   ;;  %s236_s6 = smov [#allocation10]  }
  0x21   :  { %44 = dma.vmem_to_smem %s42_s28, 16, %s235_s30, [#allocation8]  }
  0x22   :  { %s52_s7 = sshll.u32 %s236_s6, 4  ;;  %s53_s7 = int_to_ptr.vmem [resolvable:$true] %s52_s7 }
  0x23   :  { %s193_s8 = scalar_lea.vmem %s53_s7, 384  ;;  %p198_p2 = scmp.lt.s32.totalorder %s53_s7, %s53_s7 }
  0x24   :  { %p194_p1 = scmp.ne.s32.totalorder %s53_s7, %s193_s8  ;;  %p199_p3 = scmp.lt.s32.totalorder %s193_s8, %s193_s8 }
  0x26   :  { %p200_p4 = por %p199_p3, %p198_p2 }
  0x28   :  { %p201_p5 = pnand %p200_p4, %p194_p1 }
  0x2a   :  { %204 = shalt.err (!%p201_p5)
}
  0x2b   :  { %s237_s2 = smov 128   ;;  %s238_s9 = smov 8  }
  0x2c   :  { %58 = dma.hbm_to_vmem [thread:$0]  %s292_s4, 384, %s53_s7, [#allocation4], %s237_s2, %s237_s2, %s238_s9  }
  0x2d   :  { %225 = dma.done.wait [#allocation6], 32  }
  0x2e   :  { %226 = vsyncadd [#allocation6], 4294967264 }
  0x2f   :  { %227 = dma.done.wait [#allocation8], 32  }
  0x30   :  { %228 = vsyncadd [#allocation8], 4294967264 }
  0x31   :  { %229 = dma.done.wait [#allocation4], 384  }
  0x32   :  { %230 = vsyncadd [#allocation4], 4294966912 }
  0x33   :  { %71 = sfence }
  0x34   :  { %s77_s12 = sld [smem:[#allocation3]]  ;;  %v72_v0 = vld [vmem:[#allocation10] sm:$0xff]  ;;  %v74_v1 = vld [vmem:[#allocation10 + $0x8] sm:$0xff]  ;;  %v76_v2 = vld [vmem:[#allocation10 + $0x10] sm:$0xff]  ;;  %v115_v29 = vstv %s291_s3  ;;  %s239_s23 = smov [#allocation11]  }
  0x35   :  { %s135_s13 = sld [smem:[#allocation3 + $0x1]]  ;;  %s124_s24 = sshll.u32 %s239_s23, 4  ;;  %s125_s24 = int_to_ptr.vmem [resolvable:$true] %s124_s24 }
  0x36   :  { %s136_s14 = sld [smem:[#allocation3 + $0x2]]  ;;  %s205_s25 = scalar_lea.vmem %s125_s24, 128 }
  0x37   :  { %s88_s15 = sld [smem:[#allocation7]]  ;;  %p206_p6 = scmp.ne.s32.totalorder %s125_s24, %s205_s25 }
  0x38   :  { %s137_s16 = sld [smem:[#allocation3 + $0x80]]  ;;  %p210_p7 = scmp.lt.s32.totalorder %s125_s24, %s125_s24 }
  0x39   :  { %s138_s17 = sld [smem:[#allocation3 + $0x81]]  ;;  %p211_p8 = scmp.lt.s32.totalorder %s205_s25, %s205_s25 }
  0x3a   :  { %v78_v3 = vstv %s77_s12  ;;  %s139_s18 = sld [smem:[#allocation3 + $0x82]] }
  0x3b   :  { %v79_v4 = vmul.f32 %v78_v3, %v72_v0  ;;  %v81_v5 = vstv %s135_s13  ;;  %s140_s4 = sld [smem:[#allocation7 + $0x1]]  ;;  %p212_p9 = por %p211_p8, %p210_p7 }
  0x3c   :  { %v82_v6 = vmul.f32 %v81_v5, %v74_v1  ;;  %v85_v7 = vstv %s136_s14  ;;  %s107_s19 = sld [smem:[#allocation9]] }
  0x3d   :  { %v86_v8 = vmul.f32 %v85_v7, %v76_v2  ;;  %v89_v11 = vstv %s88_s15  ;;  %s141_s20 = sld [smem:[#allocation9 + $0x1]]  ;;  %p213_p10 = pnand %p212_p9, %p206_p6 }
  0x3e   :  { %v83_v9 = vadd.f32 %v82_v6, %v79_v4  ;;  %v92_v10 = vstv %s137_s16 }
  0x3f   :  { %v93_v12 = vmul.f32 %v92_v10, %v72_v0  ;;  %v95_v13 = vstv %s138_s17 }
  0x40   :  { %v87_v14 = vadd.f32 %v86_v8, %v83_v9  ;;  %v96_v15 = vmul.f32 %v95_v13, %v74_v1  ;;  %v99_v16 = vstv %s139_s18 }
  0x41   :  { %v100_v17 = vmul.f32 %v99_v16, %v76_v2  ;;  %v103_v20 = vstv %s140_s4 }
  0x42   :  { %v90_v18 = vadd.f32 %v89_v11, %v87_v14  ;;  %v97_v19 = vadd.f32 %v96_v15, %v93_v12  ;;  %v108_v23 = vstv %s107_s19 }
  0x43   :  { %v111_v25 = vstv %s141_s20 }
  0x44   :  { %v101_v21 = vadd.f32 %v100_v17, %v97_v19  ;;  %v105_v22 = vmax.f32 %v90_v18, 0.0 }
  0x46   :  { %v104_v24 = vadd.f32 %v103_v20, %v101_v21  ;;  %v109_v27 = vmul.f32 %v108_v23, %v105_v22 }
  0x48   :  { %v106_v26 = vmax.f32 %v104_v24, 0.0 }
  0x4a   :  { %v112_v28 = vmul.f32 %v111_v25, %v106_v26 }
  0x4c   :  { %v113_v30 = vadd.f32 %v112_v28, %v109_v27 }
  0x4e   :  { %v116_v31 = vadd.f32 %v115_v29, %v113_v30 }
  0x50   :  { %117 = vst [vmem:[#allocation11] sm:$0xff] %v116_v31 }
  0x51   :  { %216 = shalt.err (!%p213_p10)
}
  0x52   :  { %127 = dma.vmem_to_hbm [thread:$0]  %s125_s24, 128, %s293_s5, [#allocation5]  }
  0x53   :  { %231 = dma.done.wait [#allocation5], 128  }
  0x54   :  { %232 = vsyncadd [#allocation5], 4294967168 }
  0x55   :  { %131 = vsyncpa [#allocation4], 1 }
  0x56   :  { %132 = vsyncpa [#allocation5], 1 }
  0x57   :  { %133 = vsyncpa [#allocation6], 1 }
  0x58   :  { %134 = vsyncpa [#allocation8], 1 }

</bundles_post_ra>
